<compile_context>
chip_gen: v7x
topology: tpu7x:2x2x1
jax: 0.10.0
libtpu: 0.0.40
codegen_flags: <defaults>
</compile_context>

<pallas_src>
import functools
import math

import jax
import jax.numpy as jnp
from jax.experimental import pallas as pl
from jax.experimental.pallas import tpu as pltpu


def _cdiv(a, b):
    return -(-a // b)


def _round_up(a, b):
    return _cdiv(a, b) * b


def _default_num_splits():
    """2 column splits (one per TensorCore) on v7x, 1 on single-TC v5e/v6e."""
    try:
        kind = jax.devices()[0].device_kind.lower()
    except Exception:
        return 1
    return 2 if ("v7" in kind or "7x" in kind) else 1


def _l1_onehot_kernel(masks_ref, gt_ref, out_ref, acc_ref, *,
                      num_srcs, total_cols, tile_n, blocks_per_split,
                      needs_mask):
    """One grid step over a lane-dense (K, TILE_N) block.

    grid = (num_splits [parallel], blocks_per_split [arbitrary / reduction]).
    """
    c = pl.program_id(0)   # split / TensorCore index
    i = pl.program_id(1)   # reduction step over column blocks

    @pl.when(i == 0)
    def _():
        acc_ref[...] = jnp.zeros_like(acc_ref)

    g = gt_ref[...].astype(jnp.float32)       # (K, TN)
    m = masks_ref[...].astype(jnp.float32)    # (K, TN)

    # one-hot(argmax over the K / sublane axis), first-occurrence tie-break,
    # fused directly into the L1 term (no materialised one-hot block).
    row = jax.lax.broadcasted_iota(jnp.int32, g.shape, 0)
    maxv = jnp.max(g, axis=0, keepdims=True)                         # (1, TN)
    idx = jnp.min(jnp.where(g == maxv, row, num_srcs),
                  axis=0, keepdims=True)                             # (1, TN)
    diff = jnp.where(row == idx, jnp.abs(m - 1.0), jnp.abs(m))       # (K, TN)

    if needs_mask:
        # Ragged tail handled in-kernel (no HBM-side jnp.pad): columns at or
        # beyond total_cols (partial last block / clamped duplicate block)
        # contribute zero.  Gated so full interior blocks pay nothing extra.
        block_start = (c * blocks_per_split + i) * tile_n
        is_tail = block_start + tile_n > total_cols

        @pl.when(is_tail)
        def _():
            col = block_start + jax.lax.broadcasted_iota(
                jnp.int32, diff.shape, 1)
            acc_ref[...] += jnp.where(col < total_cols, diff, 0.0)

        @pl.when(jnp.logical_not(is_tail))
        def _():
            acc_ref[...] += diff
    else:
        acc_ref[...] += diff

    @pl.when(i == pl.num_programs(1) - 1)
    def _():
        s = jnp.sum(jnp.sum(acc_ref[...], axis=0, keepdims=True),
                    axis=1, keepdims=True)                           # (1, 1)
        out_ref[...] = jnp.broadcast_to(s, out_ref.shape)            # (8, 128)


def reconstruction_loss_multiclass(masks, gt, *, tile_n=None, num_splits=None):
    """masks, gt: CHANNEL-MAJOR (K, ...) arrays of identical shape.

    Returns mean |masks - onehot(argmax over axis 0 of gt)| (scalar f32).
    The source axis leads so the kernel's lane-dense (K, M) view is a free
    contiguous reshape -- no transpose / pad HBM passes in the wrapper.
    """
    assert masks.shape == gt.shape
    K = gt.shape[0]
    M = math.prod(gt.shape[1:])

    if num_splits is None:
        num_splits = _default_num_splits()
    if tile_n is None:
        # bf16 inputs move half the bytes per lane -> double the lanes/step.
        tile_n = 131072 if jnp.dtype(masks.dtype).itemsize <= 2 else 65536

    masks2 = masks.reshape(K, M)   # contiguous collapse: no data movement
    gt2 = gt.reshape(K, M)

    # Tile sizing: lanes per grid step, 128-aligned, capped by per-split work.
    per_split_cols = _round_up(_cdiv(M, num_splits), 128)
    tn = _round_up(min(int(tile_n), per_split_cols), 128)
    total_blocks = _cdiv(M, tn)
    nblocks = _cdiv(total_blocks, num_splits)
    needs_mask = (num_splits * nblocks * tn) != M

    kernel = functools.partial(
        _l1_onehot_kernel, num_srcs=K, total_cols=M, tile_n=tn,
        blocks_per_split=nblocks, needs_mask=needs_mask)

    def in_index(c, i):
        # Clamp so a trailing duplicate block (odd block count split across
        # two cores) stays in-bounds; its contribution is masked to zero.
        return (0, jnp.minimum(c * nblocks + i, total_blocks - 1))

    out = pl.pallas_call(
        kernel,
        out_shape=jax.ShapeDtypeStruct((num_splits * 8, 128), jnp.float32),
        grid_spec=pltpu.PrefetchScalarGridSpec(
            num_scalar_prefetch=0,
            grid=(num_splits, nblocks),
            in_specs=[
                pl.BlockSpec((K, tn), in_index),
                pl.BlockSpec((K, tn), in_index),
            ],
            out_specs=pl.BlockSpec((8, 128), lambda c, i: (c, 0)),
            scratch_shapes=[pltpu.VMEM((K, tn), jnp.float32)],
        ),
        compiler_params=pltpu.CompilerParams(
            dimension_semantics=("parallel", "arbitrary")),
    )(masks2, gt2)

    # Each core broadcast its partial sum over its (8, 128) output block.
    partials = out[0::8, 0]                                   # (num_splits,)
    return jnp.sum(partials) / jnp.float32(M * K)


def make_stft_function(win, n_freq):
    """Deterministic stand-in for the torch stft_function (plain-JAX glue).

    Emits the spectrogram CHANNEL-MAJOR, (S, B, Tf, n_freq): the transpose to
    source-first is fused into the einsum output instead of being a separate
    HBM read+write pass.  In the PyTorch module the same tensor is laid out
    (B, Tf, n_freq, S); the two are a pure relabeling of axes.
    """
    t = jnp.arange(win, dtype=jnp.float32)[:, None]
    f = jnp.arange(n_freq, dtype=jnp.float32)[None, :]
    W = (jnp.cos(2.0 * jnp.pi * t * f / win)
         + 0.5 * jnp.sin(2.0 * jnp.pi * t * (f + 1.0) / win))

    def stft_function(audio):
        # audio: (B, S, T) with T = Tf * win  ->  (S, B, Tf, n_freq)
        B, S, T = audio.shape
        Tf = T // win
        frames = audio.reshape(B, S, Tf, win)
        return jnp.abs(jnp.einsum("bstw,wf->sbtf", frames, W))

    return stft_function


def reconstruction_loss_forward(output, batch, stft_function):
    """Mirrors ReconstructionLoss.forward (multiclass=True).

    torch: src_stft is (B, Tf, F, S), split along dim=2 (frequency).
    here : src_stft is channel-major (S, B, Tf, F), so the same frequency
           split is along the LAST axis; masks are channel-major (S, B, Tf, Fh).
    """
    src_stft = jax.lax.stop_gradient(stft_function(batch["source_audio"]))
    half = src_stft.shape[-1] // 2
    gt = src_stft[..., :half]
    return reconstruction_loss_multiclass(output["masks"], gt)


def _reference_multiclass(masks, gt):
    """Pure-JAX reference on channel-major (K, ...) inputs."""
    onehot = jax.nn.one_hot(jnp.argmax(gt, axis=0), gt.shape[0],
                            dtype=jnp.float32, axis=0)
    return jnp.mean(jnp.abs(masks.astype(jnp.float32) - onehot))


def _reference_loss(output, batch, stft_function):
    src_stft = stft_function(batch["source_audio"])
    half = src_stft.shape[-1] // 2
    return _reference_multiclass(output["masks"], src_stft[..., :half])


if __name__ == "__main__":
    # Small shapes: batch=2, sources=4, frames=8, freq_half=16 (stft freq=32).
    B, S, Tf, Fh = 2, 4, 8, 16
    win, n_freq = 32, 2 * Fh
    T = Tf * win

    key = jax.random.PRNGKey(0)
    k_audio, k_masks, k_g2, k_m2 = jax.random.split(key, 4)
    source_audio = jax.random.normal(k_audio, (B, S, T), dtype=jnp.float32)
    # Mask head emits channel-major (S, B, Tf, Fh): no wrapper-side transpose.
    masks = jax.random.uniform(k_masks, (S, B, Tf, Fh), dtype=jnp.float32)

    batch = {"source_audio": source_audio}
    output = {"masks": masks}
    stft_function = make_stft_function(win, n_freq)

    loss = jax.block_until_ready(
        reconstruction_loss_forward(output, batch, stft_function))
    ref = jax.block_until_ready(_reference_loss(output, batch, stft_function))
    assert jnp.allclose(loss, ref, atol=1e-5, rtol=1e-5), (loss, ref)

    # Second check: ragged column count + forced 2-way split exercises the
    # in-kernel tail masking and the clamped duplicate-block path.
    M2 = 320                                   # not a multiple of 128
    gt2 = jax.random.normal(k_g2, (S, M2), dtype=jnp.float32)
    masks2 = jax.random.uniform(k_m2, (S, M2), dtype=jnp.float32)
    loss2 = jax.block_until_ready(
        reconstruction_loss_multiclass(masks2, gt2, tile_n=128, num_splits=2))
    ref2 = jax.block_until_ready(_reference_multiclass(masks2, gt2))
    assert jnp.allclose(loss2, ref2, atol=1e-5, rtol=1e-5), (loss2, ref2)

    print("KERNEL_OK")
</pallas_src>

<mosaic_0001>
module attributes {stable_mosaic.version = 11 : i64} {
  func.func @_l1_onehot_kernel(%arg0: i32, %arg1: i32, %arg2: memref<4x256xf32, #tpu.memory_space<vmem>>, %arg3: memref<4x256xf32, #tpu.memory_space<vmem>>, %arg4: memref<8x128xf32, #tpu.memory_space<vmem>>, %arg5: memref<4x256xf32, #tpu.memory_space<vmem>>) attributes {dimension_semantics = [#tpu.dimension_semantics<parallel>, #tpu.dimension_semantics<arbitrary>], iteration_bounds = array<i64: 1, 1>, scalar_prefetch = 0 : i64, scratch_operands = 1 : i64, tpu.core_type = #tpu.core_type<tc>, window_params = [{transform_indices = @transform_0, window_bounds = array<i64: 4, 256>}, {transform_indices = @transform_1, window_bounds = array<i64: 4, 256>}, {transform_indices = @transform_2, window_bounds = array<i64: 8, 128>}]} {
    %c0_i32 = arith.constant 0 : i32
    %0 = arith.cmpi eq, %arg1, %c0_i32 : i32
    %1 = arith.extui %0 : i1 to i32
    %c0_i32_0 = arith.constant 0 : i32
    %2 = arith.cmpi ne, %1, %c0_i32_0 : i32
    scf.if %2 {
      %cst_12 = arith.constant 0.000000e+00 : f32
      %27 = vector.broadcast %cst_12 : f32 to vector<4x256xf32>
      %c0_13 = arith.constant 0 : index
      %c0_14 = arith.constant 0 : index
      %28 = vector.load %arg5[%c0_13, %c0_14] : memref<4x256xf32, #tpu.memory_space<vmem>>, vector<4x256xf32>
      tpu.vector_store %arg5[%c0_13, %c0_14], %27 {strides = array<i32>} : memref<4x256xf32, #tpu.memory_space<vmem>>, vector<4x256xf32>,
    } else {
    }
    %c0 = arith.constant 0 : index
    %c0_1 = arith.constant 0 : index
    %3 = vector.load %arg3[%c0, %c0_1] : memref<4x256xf32, #tpu.memory_space<vmem>>, vector<4x256xf32>
    %c0_2 = arith.constant 0 : index
    %c0_3 = arith.constant 0 : index
    %4 = vector.load %arg2[%c0_2, %c0_3] : memref<4x256xf32, #tpu.memory_space<vmem>>, vector<4x256xf32>
    %5 = tpu.iota {dimensions = array<i32: 0>} : vector<4x256xi32>
    %cst = arith.constant dense<0xFF800000> : vector<256xf32>
    %6 = vector.multi_reduction <maximumf>, %3, %cst [0] : vector<4x256xf32> to vector<256xf32>
    %7 = vector.shape_cast %6 : vector<256xf32> to vector<1x256xf32>
    %8 = vector.broadcast %7 : vector<1x256xf32> to vector<4x256xf32>
    %9 = arith.cmpf oeq, %3, %8 : vector<4x256xf32>
    %c4_i32 = arith.constant 4 : i32
    %10 = vector.broadcast %c4_i32 : i32 to vector<4x256xi32>
    %11 = arith.select %9, %5, %10 : vector<4x256xi1>, vector<4x256xi32>
    %cst_4 = arith.constant dense<2147483647> : vector<256xi32>
    %12 = vector.multi_reduction <minsi>, %11, %cst_4 [0] : vector<4x256xi32> to vector<256xi32>
    %13 = vector.shape_cast %12 : vector<256xi32> to vector<1x256xi32>
    %14 = vector.broadcast %13 : vector<1x256xi32> to vector<4x256xi32>
    %15 = arith.cmpi eq, %5, %14 : vector<4x256xi32>
    %cst_5 = arith.constant 1.000000e+00 : f32
    %16 = vector.broadcast %cst_5 : f32 to vector<4x256xf32>
    %17 = arith.subf %4, %16 : vector<4x256xf32>
    %18 = math.absf %17 : vector<4x256xf32>
    %19 = math.absf %4 : vector<4x256xf32>
    %20 = arith.select %15, %18, %19 : vector<4x256xi1>, vector<4x256xf32>
    %c0_6 = arith.constant 0 : index
    %c0_7 = arith.constant 0 : index
    %21 = vector.load %arg5[%c0_6, %c0_7] : memref<4x256xf32, #tpu.memory_space<vmem>>, vector<4x256xf32>
    %22 = arith.addf %21, %20 : vector<4x256xf32>
    %c0_8 = arith.constant 0 : index
    %c0_9 = arith.constant 0 : index
    %23 = vector.load %arg5[%c0_8, %c0_9] : memref<4x256xf32, #tpu.memory_space<vmem>>, vector<4x256xf32>
    tpu.vector_store %arg5[%c0_8, %c0_9], %22 {strides = array<i32>} : memref<4x256xf32, #tpu.memory_space<vmem>>, vector<4x256xf32>,
    %c0_i32_10 = arith.constant 0 : i32
    %24 = arith.cmpi eq, %arg1, %c0_i32_10 : i32
    %25 = arith.extui %24 : i1 to i32
    %c0_i32_11 = arith.constant 0 : i32
    %26 = arith.cmpi ne, %25, %c0_i32_11 : i32
    scf.if %26 {
      %c0_12 = arith.constant 0 : index
      %c0_13 = arith.constant 0 : index
      %27 = vector.load %arg5[%c0_12, %c0_13] : memref<4x256xf32, #tpu.memory_space<vmem>>, vector<4x256xf32>
      %cst_14 = arith.constant dense<0.000000e+00> : vector<256xf32>
      %28 = vector.multi_reduction <add>, %27, %cst_14 [0] : vector<4x256xf32> to vector<256xf32>
      %29 = vector.shape_cast %28 : vector<256xf32> to vector<1x256xf32>
      %cst_15 = arith.constant dense<0.000000e+00> : vector<1xf32>
      %30 = vector.multi_reduction <add>, %29, %cst_15 [1] : vector<1x256xf32> to vector<1xf32>
      %31 = vector.shape_cast %30 : vector<1xf32> to vector<1x1xf32>
      %32 = vector.shape_cast %31 : vector<1x1xf32> to vector<1x1xf32>
      %33 = vector.broadcast %32 : vector<1x1xf32> to vector<8x128xf32>
      %c0_16 = arith.constant 0 : index
      %c0_17 = arith.constant 0 : index
      %34 = vector.load %arg4[%c0_16, %c0_17] : memref<8x128xf32, #tpu.memory_space<vmem>>, vector<8x128xf32>
      tpu.vector_store %arg4[%c0_16, %c0_17], %33 {strides = array<i32>} : memref<8x128xf32, #tpu.memory_space<vmem>>, vector<8x128xf32>,
    } else {
    }
    return
  }
  func.func @transform_0(%arg0: i32, %arg1: i32) -> (i32, i32) {
    %c1_i32 = arith.constant 1 : i32
    %0 = arith.muli %arg0, %c1_i32 : i32
    %1 = arith.addi %0, %arg1 : i32
    %c0_i32 = arith.constant 0 : i32
    %2 = arith.minsi %1, %c0_i32 : i32
    %c0_i32_0 = arith.constant 0 : i32
    %c0_i32_1 = arith.constant 0 : i32
    return %c0_i32_0, %2 : i32, i32
  }
  func.func @transform_1(%arg0: i32, %arg1: i32) -> (i32, i32) {
    %c1_i32 = arith.constant 1 : i32
    %0 = arith.muli %arg0, %c1_i32 : i32
    %1 = arith.addi %0, %arg1 : i32
    %c0_i32 = arith.constant 0 : i32
    %2 = arith.minsi %1, %c0_i32 : i32
    %c0_i32_0 = arith.constant 0 : i32
    %c0_i32_1 = arith.constant 0 : i32
    return %c0_i32_0, %2 : i32, i32
  }
  func.func @transform_2(%arg0: i32, %arg1: i32) -> (i32, i32) {
    %c0_i32 = arith.constant 0 : i32
    %c0_i32_0 = arith.constant 0 : i32
    return %arg0, %c0_i32 : i32, i32
  }
}

</mosaic_0001>

<bundles_post_ra>
// kernel: tpu_custom_call.1
= control target key start
LH: loop header
LB: loop body
LE: loop exit
PB: predicated region body
PF: predicated region fallthrough
CT: control target
= control target key end

     0   :  { %7 = vsyncpa [#allocation4], 0  ;;  %s322_s0 = inlined_call_operand.hbm [shape: f32[4,256], index: 0, kind: input, shape index: {}]   ;;  %s323_s1 = inlined_call_operand.hbm [shape: f32[4,256], index: 1, kind: input, shape index: {}]   ;;  %s324_s2 = inlined_call_operand.hbm [shape: f32[8,128], index: 2, kind: output, shape index: {}]  }
   0x1   :  { %8 = vsyncpa [#allocation7], 0 }
   0x2   :  { %9 = vsyncpa [#allocation5], 0  ;;  %s261_s9 = smov [#allocation3]   ;;  %s262_s11 = smov [#allocation6]  }
   0x3   :  { %s22_s10 = sshll.u32 %s261_s9, 4  ;;  %s38_s12 = sshll.u32 %s262_s11, 4  ;;  %s23_s10 = int_to_ptr.vmem [resolvable:$true] %s22_s10  ;;  %s39_s12 = int_to_ptr.vmem [resolvable:$true] %s38_s12 }
   0x4   :  { %s189_s15 = scalar_lea.hbm %s322_s0, 128 }
   0x5   :  { %p190_p0 = scmp.ne.s32.totalorder %s322_s0, %s189_s15  ;;  %p193_p1 = scmp.lt.u32.totalorder %s189_s15, %s322_s0 }
   0x7   :  { %p195_p2 = pnand %p193_p1, %p190_p0 }
   0x9   :  { %198 = shalt.err (!%p195_p2)
}
   0xa   :  { %s199_s20 = scalar_lea.vmem %s23_s10, 128  ;;  %p204_p4 = scmp.lt.s32.totalorder %s23_s10, %s23_s10 }
   0xb   :  { %p200_p3 = scmp.ne.s32.totalorder %s23_s10, %s199_s20  ;;  %p205_p5 = scmp.lt.s32.totalorder %s199_s20, %s199_s20 }
   0xd   :  { %p206_p6 = por %p205_p5, %p204_p4 }
   0xf   :  { %p207_p7 = pnand %p206_p6, %p200_p3 }
  0x11   :  { %210 = shalt.err (!%p207_p7)
}
  0x12   :  { %25 = dma.hbm_to_vmem [thread:$0]  %s322_s0, 128, %s23_s10, [#allocation4]  }
  0x13   :  { %s211_s25 = scalar_lea.hbm %s323_s1, 128 }
  0x14   :  { %p212_p8 = scmp.ne.s32.totalorder %s323_s1, %s211_s25  ;;  %p215_p9 = scmp.lt.u32.totalorder %s211_s25, %s323_s1 }
  0x16   :  { %p217_p10 = pnand %p215_p9, %p212_p8 }
  0x18   :  { %220 = shalt.err (!%p217_p10)
}
  0x19   :  { %s221_s30 = scalar_lea.vmem %s39_s12, 128  ;;  %p226_p12 = scmp.lt.s32.totalorder %s39_s12, %s39_s12 }
  0x1a   :  { %p222_p11 = scmp.ne.s32.totalorder %s39_s12, %s221_s30  ;;  %p227_p13 = scmp.lt.s32.totalorder %s221_s30, %s221_s30 }
  0x1c   :  { %p228_p0 = por %p227_p13, %p226_p12 }
  0x1e   :  { %p229_p1 = pnand %p228_p0, %p222_p11 }
  0x20   :  { %232 = shalt.err (!%p229_p1)
}
  0x21   :  { %41 = dma.hbm_to_vmem [thread:$0]  %s323_s1, 128, %s39_s12, [#allocation7]  }
  0x22   :  { %255 = dma.done.wait [#allocation4], 128  }
  0x23   :  { %256 = vsyncadd [#allocation4], 4294967168 }
  0x24   :  { %257 = dma.done.wait [#allocation7], 128  }
  0x25   :  { %258 = vsyncadd [#allocation7], 4294967168  ;;  %vm68_vm0 = vcmask 1043456   ;;  %v61_v0 = vld [vmem:[#allocation6] sm:$0xff]  ;;  %v63_v4 = vlaneseq  ;;  %v263_v6 = vmov 839922192  }
  0x26   :  { %v66_v1 = vcombine.high %v61_v0, %v61_v0  ;;  %v69_v2 = vsel %vm68_vm0, %v61_v0, -inf  ;;  %v89_v7 = vunpack.c.l.s4 %v263_v6  ;;  %v62_v27 = vld [vmem:[#allocation3] sm:$0xff]  ;;  %s264_s1 = smov [#allocation8]  }
  0x27   :  { %v70_v3 = vrot.slane %v69_v2, 4  ;;  %v64_v12 = vshrl.u32 %v63_v4, 7  ;;  %v182_v32 = vadd.f32 -1.0, %v62_v27  ;;  %v121_v38 = vand.u32 2147483647, %v62_v27  ;;  %s168_s4 = sshll.u32 %s264_s1, 4  ;;  %s169_s4 = int_to_ptr.vmem [resolvable:$true] %s168_s4 }
  0x28   :  { %v76_v5 = vsel %vm68_vm0, %v66_v1, -inf  ;;  %v90_v13 = vunpack.c.0.s8 %v89_v7  ;;  %s233_s5 = scalar_lea.vmem %s169_s4, 128  ;;  %p238_p3 = scmp.lt.s32.totalorder %s169_s4, %s169_s4 }
  0x29   :  { %v71_v8 = vmax.f32 %v69_v2, %v70_v3  ;;  %v77_v9 = vrot.slane %v76_v5, 4  ;;  %v120_v37 = vand.u32 2147483647, %v182_v32  ;;  %v126_v44 = vcombine.high %v121_v38, %v121_v38  ;;  %p234_p2 = scmp.ne.s32.totalorder %s169_s4, %s233_s5  ;;  %p239_p4 = scmp.lt.s32.totalorder %s233_s5, %s233_s5 }
  0x2a   :  { %v93_v18 = vsub.s32 %v90_v13, %v64_v12 }
  0x2b   :  { %v72_v10 = vrot.slane %v71_v8, 2  ;;  %v78_v11 = vmax.f32 %v76_v5, %v77_v9  ;;  %v123_v43 = vcombine.high %v120_v37, %v120_v37  ;;  %p240_p5 = por %p239_p4, %p238_p3 }
  0x2c   :  { %v94_v22 = vrot.slane %v64_v12, %v93_v18 }
  0x2d   :  { %v73_v14 = vmax.f32 %v71_v8, %v72_v10  ;;  %v79_v15 = vrot.slane %v78_v11, 2  ;;  %p241_p6 = pnand %p240_p5, %p234_p2 }
  0x2f   :  { %v74_v16 = vrot.slane %v73_v14, 1  ;;  %v80_v17 = vmax.f32 %v78_v11, %v79_v15 }
  0x31   :  { %v75_v19 = vmax.f32 %v73_v14, %v74_v16  ;;  %v81_v20 = vrot.slane %v80_v17, 1 }
  0x33   :  { %v82_v21 = vmax.f32 %v80_v17, %v81_v20 }
  0x35   :  { %v85_v23 = vcombine.low %v75_v19, %v82_v21 }
  0x37   :  { %vm87_vm1 = vcmp.eq.f32.partialorder %v61_v0, %v85_v23 }
  0x38   :  { %v95_v24 = vsel %vm87_vm1, %v94_v22, 4 }
  0x39   :  { %v96_v25 = vcombine.high %v95_v24, %v95_v24  ;;  %v97_v26 = vsel %vm68_vm0, %v95_v24, 2147483647 }
  0x3a   :  { %v98_v28 = vrot.slane %v97_v26, 4 }
  0x3b   :  { %v107_v29 = vsel %vm68_vm0, %v96_v25, 2147483647 }
  0x3c   :  { %vm99_vm2 = vcmp.lt.s32.totalorder %v97_v26, %v98_v28  ;;  %v108_v30 = vrot.slane %v107_v29, 4 }
  0x3d   :  { %v100_v31 = vsel %vm99_vm2, %v97_v26, %v98_v28 }
  0x3e   :  { %v101_v33 = vrot.slane %v100_v31, 2  ;;  %vm109_vm3 = vcmp.lt.s32.totalorder %v107_v29, %v108_v30 }
  0x3f   :  { %v110_v34 = vsel %vm109_vm3, %v107_v29, %v108_v30 }
  0x40   :  { %vm102_vm4 = vcmp.lt.s32.totalorder %v100_v31, %v101_v33  ;;  %v111_v35 = vrot.slane %v110_v34, 2 }
  0x41   :  { %v103_v36 = vsel %vm102_vm4, %v100_v31, %v101_v33 }
  0x42   :  { %v104_v39 = vrot.slane %v103_v36, 1  ;;  %vm112_vm5 = vcmp.lt.s32.totalorder %v110_v34, %v111_v35 }
  0x43   :  { %v113_v40 = vsel %vm112_vm5, %v110_v34, %v111_v35 }
  0x44   :  { %vm105_vm6 = vcmp.lt.s32.totalorder %v103_v36, %v104_v39  ;;  %v114_v41 = vrot.slane %v113_v40, 1 }
  0x45   :  { %v106_v42 = vsel %vm105_vm6, %v103_v36, %v104_v39 }
  0x46   :  { %vm115_vm7 = vcmp.lt.s32.totalorder %v113_v40, %v114_v41  ;;  %vm117_vm8 = vcmp.eq.s32.totalorder %v64_v12, %v106_v42 }
  0x47   :  { %v116_v45 = vsel %vm115_vm7, %v113_v40, %v114_v41  ;;  %v128_v46 = vsel %vm117_vm8, %v120_v37, %v121_v38 }
  0x48   :  { %vm118_vm9 = vcmp.eq.s32.totalorder %v64_v12, %v116_v45 }
  0x49   :  { %v129_v47 = vsel %vm118_vm9, %v123_v43, %v126_v44 }
  0x4a   :  { %v133_v48 = vcombine.low %v128_v46, %v129_v47  ;;  %v183_v49 = vcombine.low %v129_v47, %v129_v47 }
  0x4c   :  { %v144_v50 = vsel %vm68_vm0, %v133_v48, 0.0  ;;  %v151_v51 = vsel %vm68_vm0, %v183_v49, 0.0 }
  0x4d   :  { %v145_v52 = vrot.slane %v144_v50, 4  ;;  %v152_v53 = vrot.slane %v151_v51, 4 }
  0x4f   :  { %v146_v54 = vadd.f32 %v145_v52, %v144_v50  ;;  %v153_v55 = vadd.f32 %v152_v53, %v151_v51 }
  0x51   :  { %v147_v56 = vrot.slane %v146_v54, 2  ;;  %v154_v57 = vrot.slane %v153_v55, 2 }
  0x53   :  { %v148_v58 = vadd.f32 %v147_v56, %v146_v54  ;;  %v155_v59 = vadd.f32 %v154_v57, %v153_v55 }
  0x55   :  { %v149_v60 = vrot.slane %v148_v58, 1  ;;  %v156_v61 = vrot.slane %v155_v59, 1 }
  0x57   :  { %v150_v62 = vadd.f32 %v149_v60, %v148_v58  ;;  %v157_v63 = vadd.f32 %v156_v61, %v155_v59 }
  0x59   :  { %v158_v0 = vadd.f32 %v157_v63, %v150_v62 }
  0x5b   :  { %159 = vadd.xlane.f32.xlu0 %v158_v0 }
  0xe8   :  { %v160_v1 = vpop.xlane.xlu0 %159 }
  0xe9   :  { %161 = vst [vmem:[#allocation8] sm:$0xff] %v160_v1 }
  0xea   :  { %244 = shalt.err (!%p241_p6)
}
  0xeb   :  { %s245_s8 = scalar_lea.hbm %s324_s2, 128 }
  0xec   :  { %p246_p7 = scmp.ne.s32.totalorder %s324_s2, %s245_s8  ;;  %p249_p8 = scmp.lt.u32.totalorder %s245_s8, %s324_s2 }
  0xee   :  { %p251_p9 = pnand %p249_p8, %p246_p7 }
  0xf0   :  { %254 = shalt.err (!%p251_p9)
}
  0xf1   :  { %171 = dma.vmem_to_hbm [thread:$0]  %s169_s4, 128, %s324_s2, [#allocation5]  }
  0xf2   :  { %259 = dma.done.wait [#allocation5], 128  }
  0xf3   :  { %260 = vsyncadd [#allocation5], 4294967168 }
  0xf4   :  { %175 = vsyncpa [#allocation4], 1 }
  0xf5   :  { %176 = vsyncpa [#allocation7], 1 }
  0xf6   :  { %177 = vsyncpa [#allocation5], 1 }

</bundles_post_ra>
